<compile_context>
chip_gen: v7x
topology: tpu7x:2x2x1
jax: 0.10.0
libtpu: 0.0.40
codegen_flags: <defaults>
</compile_context>

<pallas_src>
import functools

import jax
import jax.numpy as jnp
from jax.experimental import pallas as pl
from jax.experimental.pallas import tpu as pltpu


_LANE = 128      # TPU vreg lane width
_SUBLANE = 8     # TPU vreg sublane count


def _ceil_to(x, m):
    return -(-x // m) * m


def _vmem_limit_bytes():
    """Generation-aware scoped-VMEM request (bytes)."""
    cap = 64 * 1024 * 1024                      # conservative fallback = v7x per-TC physical
    try:
        cap = int(pltpu.get_tpu_info().vmem_capacity_bytes)
    except Exception:
        pass
    # ~3/4 of physical, capped at 64 MiB: ~48 MiB on v7x (64 MiB/TC), 64 MiB on
    # v5e/v6e (128 MiB physical) -- well above the 16/32 MiB scoped defaults.
    return max(min((cap * 3) // 4, 64 * 1024 * 1024), 32 * 1024 * 1024)


# ---------------------------------------------------------------------------
# Path A: full-batch feature strips (reduction over N contained in each block).
# ---------------------------------------------------------------------------

def _batchnorm_kernel(x_ref, gamma_ref, beta_ref, out_ref, *, eps, inv_n):
    # One (N, TD) feature strip is VMEM-resident; grid steps are independent.
    # The f32 cast is folded into each pass (no persistent f32 copy of the tile).
    inv_n = jnp.float32(inv_n)

    # Pass 1: mean over the batch.
    mu = jnp.sum(x_ref[...].astype(jnp.float32), axis=0, keepdims=True) * inv_n

    # Pass 2: biased variance (kept two-pass for numerical robustness; the extra
    # VMEM read is hidden under the HBM DMA on all generations).
    diff = x_ref[...].astype(jnp.float32) - mu
    var = jnp.sum(diff * diff, axis=0, keepdims=True) * inv_n
    sig_inv = jax.lax.rsqrt(var + jnp.float32(eps))

    gamma = gamma_ref[...].astype(jnp.float32)
    beta = beta_ref[...].astype(jnp.float32)
    scale = gamma * sig_inv
    shift = beta - mu * scale

    # Pass 3: fused affine, out = x * scale + shift (one FMA per element).
    out_ref[...] = (x_ref[...].astype(jnp.float32) * scale + shift).astype(out_ref.dtype)


def _choose_block_d(n, d, itemsize, tile_budget):
    """Widest lane-aligned feature strip whose pipelined working set fits the
    budget.  Returns None if even a 128-lane full-N strip does not fit (use the
    two-pass N-tiled path instead)."""
    # Double-buffered x-in + out strips (I/O dtype) + ~3 f32 temporaries the
    # compiler may materialize + gamma/beta/scale/shift columns.
    bytes_per_col = n * (4 * itemsize + 12) + 64
    td = tile_budget // max(bytes_per_col, 1)
    td = (td // _LANE) * _LANE
    if td < _LANE:
        return None
    if td >= d:
        # Whole feature dim fits in one strip.  Still split into >= 2 strips when
        # lane-alignable so ("parallel",) can use both TensorCores on v7x.
        if d >= 2 * _LANE:
            return min(td, _ceil_to((d + 1) // 2, _LANE))
        return d
    return td


def _batchnorm_strips(x, gamma2d, beta2d, eps, block_d, vmem_limit):
    n, d = x.shape
    grid = (pl.cdiv(d, block_d),)
    kernel = functools.partial(_batchnorm_kernel, eps=eps, inv_n=1.0 / n)
    return pl.pallas_call(
        kernel,
        out_shape=jax.ShapeDtypeStruct((n, d), x.dtype),
        grid_spec=pltpu.PrefetchScalarGridSpec(
            num_scalar_prefetch=0,
            grid=grid,
            in_specs=[
                pl.BlockSpec((n, block_d), lambda j: (0, j)),   # x strip
                # gamma/beta per-strip: a resident (1, d) buffer would need an OOB
                # dynamic slice when the last strip is partial; these DMAs are tiny.
                pl.BlockSpec((1, block_d), lambda j: (0, j)),
                pl.BlockSpec((1, block_d), lambda j: (0, j)),
            ],
            out_specs=pl.BlockSpec((n, block_d), lambda j: (0, j)),
        ),
        compiler_params=pltpu.CompilerParams(
            dimension_semantics=("parallel",),
            vmem_limit_bytes=vmem_limit,
        ),
    )(x, gamma2d, beta2d)


# ---------------------------------------------------------------------------
# Path B: large-N two-pass path (stats kernel + fused normalize kernel).
# ---------------------------------------------------------------------------

def _stats_kernel(x_ref, sum_ref, sumsq_ref, *, n_total, mask_rows):
    # Grid = (D strips [parallel], N strips [arbitrary, last]).  The output
    # block index is constant along the N axis, so the accumulators stay
    # VMEM-resident and are written back once per D strip.
    @pl.when(pl.program_id(1) == 0)
    def _():
        sum_ref[...] = jnp.zeros_like(sum_ref)
        sumsq_ref[...] = jnp.zeros_like(sumsq_ref)

    x = x_ref[...].astype(jnp.float32)
    if mask_rows:
        row = (pl.program_id(1) * x.shape[0]
               + jax.lax.broadcasted_iota(jnp.int32, x.shape, 0))
        x = jnp.where(row < n_total, x, jnp.float32(0.0))
    sum_ref[...] += jnp.sum(x, axis=0, keepdims=True)
    sumsq_ref[...] += jnp.sum(x * x, axis=0, keepdims=True)


def _apply_kernel(x_ref, scale_ref, shift_ref, out_ref):
    out_ref[...] = (x_ref[...].astype(jnp.float32) * scale_ref[...]
                    + shift_ref[...]).astype(out_ref.dtype)


def _batchnorm_two_pass(x, gamma2d, beta2d, eps, vmem_limit, *,
                        block_n=None, block_d=None):
    n, d = x.shape
    itemsize = jnp.dtype(x.dtype).itemsize
    tile_budget = (vmem_limit * 7) // 10

    if block_d is None:
        block_d = d if d < _LANE else (min(d, 512) // _LANE) * _LANE
    if block_n is None:
        bytes_per_row = block_d * (4 * itemsize + 12)
        block_n = min(tile_budget // max(bytes_per_row, 1), 4096)
        if block_n >= n:
            block_n = n
        else:
            block_n = max(_SUBLANE, (block_n // _SUBLANE) * _SUBLANE)

    num_d = pl.cdiv(d, block_d)
    num_n = pl.cdiv(n, block_n)
    mask_rows = (n % block_n) != 0

    # Pass 1: per-feature sum and sum of squares.
    sums, sumsqs = pl.pallas_call(
        functools.partial(_stats_kernel, n_total=n, mask_rows=mask_rows),
        out_shape=(jax.ShapeDtypeStruct((1, d), jnp.float32),
                   jax.ShapeDtypeStruct((1, d), jnp.float32)),
        grid_spec=pltpu.PrefetchScalarGridSpec(
            num_scalar_prefetch=0,
            grid=(num_d, num_n),
            in_specs=[pl.BlockSpec((block_n, block_d), lambda jd, jn: (jn, jd))],
            out_specs=[pl.BlockSpec((1, block_d), lambda jd, jn: (0, jd)),
                       pl.BlockSpec((1, block_d), lambda jd, jn: (0, jd))],
        ),
        compiler_params=pltpu.CompilerParams(
            dimension_semantics=("parallel", "arbitrary"),
            vmem_limit_bytes=vmem_limit,
        ),
    )(x)

    # Tiny (1, D) f32 math between the two kernels.
    inv_n = jnp.float32(1.0 / n)
    mean = sums * inv_n
    # Single-pass variance E[x^2] - mean^2 in f32, clamped >= 0.  NOTE: slight
    # cancellation risk if |mean| >> std; accumulators are f32 and clamped.
    var = jnp.maximum(sumsqs * inv_n - mean * mean, jnp.float32(0.0))
    sig_inv = jax.lax.rsqrt(var + jnp.float32(eps))
    scale = gamma2d.astype(jnp.float32) * sig_inv
    shift = beta2d.astype(jnp.float32) - mean * scale

    # Pass 2: fused normalize (pure elementwise, fully tiled & parallel).
    return pl.pallas_call(
        _apply_kernel,
        out_shape=jax.ShapeDtypeStruct((n, d), x.dtype),
        grid_spec=pltpu.PrefetchScalarGridSpec(
            num_scalar_prefetch=0,
            grid=(num_n, num_d),
            in_specs=[pl.BlockSpec((block_n, block_d), lambda i, j: (i, j)),
                      pl.BlockSpec((1, block_d), lambda i, j: (0, j)),
                      pl.BlockSpec((1, block_d), lambda i, j: (0, j))],
            out_specs=pl.BlockSpec((block_n, block_d), lambda i, j: (i, j)),
        ),
        compiler_params=pltpu.CompilerParams(
            dimension_semantics=("parallel", "parallel"),
            vmem_limit_bytes=vmem_limit,
        ),
    )(x, scale, shift)


# ---------------------------------------------------------------------------
# Public entry points.
# ---------------------------------------------------------------------------

def custom_batchnorm_forward(x, gamma, beta, eps=1e-5, *, block_d=None,
                             force_two_pass=False):
    """Batch norm forward: x (N, D), gamma (D,), beta (D,) -> (N, D)."""
    n, d = x.shape
    assert gamma.shape == (d,) and beta.shape == (d,)

    gamma2d = gamma.reshape(1, d)
    beta2d = beta.reshape(1, d)
    vmem_limit = _vmem_limit_bytes()
    itemsize = jnp.dtype(x.dtype).itemsize

    if not force_two_pass:
        if block_d is None:
            block_d = _choose_block_d(n, d, itemsize, (vmem_limit * 7) // 10)
        if block_d is not None:
            return _batchnorm_strips(x, gamma2d, beta2d, eps, block_d, vmem_limit)

    # Large-N (or forced) path: full-N strips do not fit VMEM.
    return _batchnorm_two_pass(x, gamma2d, beta2d, eps, vmem_limit)


class CustomBatchNormManual:
    """JAX/Pallas port of CustomBatchNormManualModule (forward only)."""

    def __init__(self, n_neurons, eps=1e-5):
        self.n_neurons = n_neurons
        self.eps = eps
        # Deterministic init matching nn.Parameter(torch.ones/zeros).
        self.gamma = jnp.ones((n_neurons,), dtype=jnp.float32)
        self.beta = jnp.zeros((n_neurons,), dtype=jnp.float32)

    def __call__(self, x):
        assert x.shape[1] == self.n_neurons
        return custom_batchnorm_forward(x, self.gamma, self.beta, self.eps)


def _reference(x, gamma, beta, eps):
    xf = x.astype(jnp.float32)
    mu = xf.mean(axis=0)
    var = ((xf - mu) ** 2).mean(axis=0)
    out = gamma * (xf - mu) / jnp.sqrt(var + eps) + beta
    return out.astype(x.dtype)


if __name__ == "__main__":
    # 1) Small shape matching the module's (n_batch, n_neurons) layout.
    key = jax.random.PRNGKey(0)
    n_batch, n_neurons = 8, 32
    x_small = jax.random.normal(key, (n_batch, n_neurons), dtype=jnp.float32) * 2.0 + 1.5

    module = CustomBatchNormManual(n_neurons, eps=1e-5)
    out_small = jax.block_until_ready(module(x_small))
    ref_small = _reference(x_small, module.gamma, module.beta, module.eps)
    assert out_small.shape == (n_batch, n_neurons)
    assert jnp.allclose(out_small, ref_small, atol=1e-5, rtol=1e-5)

    # 2) Lane-aligned shape exercising the widened, multi-strip Path A
    #    (auto block_d splits D into >= 2 strips for v7x megacore).
    n2, d2 = 128, 1024
    x_big = jax.random.normal(jax.random.PRNGKey(0), (n2, d2), dtype=jnp.float32)
    g_big = jax.random.normal(jax.random.PRNGKey(1), (d2,), dtype=jnp.float32)
    b_big = jax.random.normal(jax.random.PRNGKey(2), (d2,), dtype=jnp.float32)
    out_big = jax.block_until_ready(
        custom_batchnorm_forward(x_big, g_big, b_big, eps=1e-5))
    ref_big = _reference(x_big, g_big, b_big, 1e-5)
    assert jnp.allclose(out_big, ref_big, atol=1e-3, rtol=1e-3)

    # 3) bf16 I/O (dtype-aware tiling; compute stays in f32).
    x_bf = (jax.random.normal(jax.random.PRNGKey(3), (64, 256), dtype=jnp.float32)
            ).astype(jnp.bfloat16)
    g_bf = jax.random.normal(jax.random.PRNGKey(4), (256,), dtype=jnp.float32)
    b_bf = jax.random.normal(jax.random.PRNGKey(5), (256,), dtype=jnp.float32)
    out_bf = jax.block_until_ready(custom_batchnorm_forward(x_bf, g_bf, b_bf, eps=1e-5))
    ref_bf = _reference(x_bf, g_bf, b_bf, 1e-5)
    assert jnp.allclose(out_bf.astype(jnp.float32), ref_bf.astype(jnp.float32),
                        atol=5e-2, rtol=5e-2)

    # 4) Two-pass N-tiled path (small blocks forced so multi-N-block masking
    #    and the accumulator pattern are exercised at a small shape).
    n3, d3 = 200, 384
    x_tp = jax.random.normal(jax.random.PRNGKey(6), (n3, d3), dtype=jnp.float32)
    g_tp = jax.random.normal(jax.random.PRNGKey(7), (d3,), dtype=jnp.float32)
    b_tp = jax.random.normal(jax.random.PRNGKey(8), (d3,), dtype=jnp.float32)
    out_tp = jax.block_until_ready(
        _batchnorm_two_pass(x_tp, g_tp.reshape(1, d3), b_tp.reshape(1, d3), 1e-5,
                            _vmem_limit_bytes(), block_n=64, block_d=128))
    ref_tp = _reference(x_tp, g_tp, b_tp, 1e-5)
    assert jnp.allclose(out_tp, ref_tp, atol=2e-3, rtol=2e-3)

    print("KERNEL_OK")
</pallas_src>

<mosaic_0001>
module attributes {stable_mosaic.version = 11 : i64} {
  func.func @_batchnorm_kernel(%arg0: i32, %arg1: memref<8x32xf32, #tpu.memory_space<vmem>>, %arg2: memref<1x32xf32, #tpu.memory_space<vmem>>, %arg3: memref<1x32xf32, #tpu.memory_space<vmem>>, %arg4: memref<8x32xf32, #tpu.memory_space<vmem>>) attributes {dimension_semantics = [#tpu.dimension_semantics<parallel>], iteration_bounds = array<i64: 1>, scalar_prefetch = 0 : i64, scratch_operands = 0 : i64, tpu.core_type = #tpu.core_type<tc>, window_params = [{transform_indices = @transform_0, window_bounds = array<i64: 8, 32>}, {transform_indices = @transform_1, window_bounds = array<i64: 1, 32>}, {transform_indices = @transform_2, window_bounds = array<i64: 1, 32>}, {transform_indices = @transform_3, window_bounds = array<i64: 8, 32>}]} {
    %c0 = arith.constant 0 : index
    %c0_0 = arith.constant 0 : index
    %0 = vector.load %arg1[%c0, %c0_0] : memref<8x32xf32, #tpu.memory_space<vmem>>, vector<8x32xf32>
    %cst = arith.constant dense<0.000000e+00> : vector<32xf32>
    %1 = vector.multi_reduction <add>, %0, %cst [0] : vector<8x32xf32> to vector<32xf32>
    %2 = vector.shape_cast %1 : vector<32xf32> to vector<1x32xf32>
    %cst_1 = arith.constant 1.250000e-01 : f32
    %3 = vector.broadcast %cst_1 : f32 to vector<1x32xf32>
    %4 = arith.mulf %2, %3 : vector<1x32xf32>
    %c0_2 = arith.constant 0 : index
    %c0_3 = arith.constant 0 : index
    %5 = vector.load %arg1[%c0_2, %c0_3] : memref<8x32xf32, #tpu.memory_space<vmem>>, vector<8x32xf32>
    %6 = vector.broadcast %4 : vector<1x32xf32> to vector<8x32xf32>
    %7 = arith.subf %5, %6 : vector<8x32xf32>
    %8 = arith.mulf %7, %7 : vector<8x32xf32>
    %cst_4 = arith.constant dense<0.000000e+00> : vector<32xf32>
    %9 = vector.multi_reduction <add>, %8, %cst_4 [0] : vector<8x32xf32> to vector<32xf32>
    %10 = vector.shape_cast %9 : vector<32xf32> to vector<1x32xf32>
    %cst_5 = arith.constant 1.250000e-01 : f32
    %11 = vector.broadcast %cst_5 : f32 to vector<1x32xf32>
    %12 = arith.mulf %10, %11 : vector<1x32xf32>
    %cst_6 = arith.constant 9.99999974E-6 : f32
    %13 = vector.broadcast %cst_6 : f32 to vector<1x32xf32>
    %14 = arith.addf %12, %13 : vector<1x32xf32>
    %15 = math.rsqrt %14 : vector<1x32xf32>
    %c0_7 = arith.constant 0 : index
    %c0_8 = arith.constant 0 : index
    %16 = vector.load %arg2[%c0_7, %c0_8] : memref<1x32xf32, #tpu.memory_space<vmem>>, vector<1x32xf32>
    %c0_9 = arith.constant 0 : index
    %c0_10 = arith.constant 0 : index
    %17 = vector.load %arg3[%c0_9, %c0_10] : memref<1x32xf32, #tpu.memory_space<vmem>>, vector<1x32xf32>
    %18 = arith.mulf %16, %15 : vector<1x32xf32>
    %19 = arith.mulf %4, %18 : vector<1x32xf32>
    %20 = arith.subf %17, %19 : vector<1x32xf32>
    %c0_11 = arith.constant 0 : index
    %c0_12 = arith.constant 0 : index
    %21 = vector.load %arg1[%c0_11, %c0_12] : memref<8x32xf32, #tpu.memory_space<vmem>>, vector<8x32xf32>
    %22 = vector.broadcast %18 : vector<1x32xf32> to vector<8x32xf32>
    %23 = arith.mulf %21, %22 : vector<8x32xf32>
    %24 = vector.broadcast %20 : vector<1x32xf32> to vector<8x32xf32>
    %25 = arith.addf %23, %24 : vector<8x32xf32>
    %c0_13 = arith.constant 0 : index
    %c0_14 = arith.constant 0 : index
    %26 = vector.load %arg4[%c0_13, %c0_14] : memref<8x32xf32, #tpu.memory_space<vmem>>, vector<8x32xf32>
    tpu.vector_store %arg4[%c0_13, %c0_14], %25 {strides = array<i32>} : memref<8x32xf32, #tpu.memory_space<vmem>>, vector<8x32xf32>,
    return
  }
  func.func @transform_0(%arg0: i32) -> (i32, i32) {
    %c0_i32 = arith.constant 0 : i32
    %c0_i32_0 = arith.constant 0 : i32
    return %c0_i32, %arg0 : i32, i32
  }
  func.func @transform_1(%arg0: i32) -> (i32, i32) {
    %c0_i32 = arith.constant 0 : i32
    %c0_i32_0 = arith.constant 0 : i32
    return %c0_i32, %arg0 : i32, i32
  }
  func.func @transform_2(%arg0: i32) -> (i32, i32) {
    %c0_i32 = arith.constant 0 : i32
    %c0_i32_0 = arith.constant 0 : i32
    return %c0_i32, %arg0 : i32, i32
  }
  func.func @transform_3(%arg0: i32) -> (i32, i32) {
    %c0_i32 = arith.constant 0 : i32
    %c0_i32_0 = arith.constant 0 : i32
    return %c0_i32, %arg0 : i32, i32
  }
}

</mosaic_0001>

<bundles_post_ra>
// kernel: tpu_custom_call.1
= control target key start
LH: loop header
LB: loop body
LE: loop exit
PB: predicated region body
PF: predicated region fallthrough
CT: control target
= control target key end

     0   :  { %8 = vsyncpa [#allocation3], 0  ;;  %s191_s0 = inlined_call_operand.hbm [shape: f32[8,32], index: 0, kind: input, shape index: {}]   ;;  %s192_s1 = inlined_call_operand.vmem [shape: f32[1,32], index: 1, kind: input, shape index: {}]   ;;  %s193_s2 = inlined_call_operand.vmem [shape: f32[1,32], index: 2, kind: input, shape index: {}]   ;;  %s194_s3 = inlined_call_operand.hbm [shape: f32[8,32], index: 3, kind: output, shape index: {}]  }
   0x1   :  { %9 = vsyncpa [#allocation4], 0  ;;  %s136_s12 = smov [#allocation2]   ;;  %s88_s16 = scalar_lea.hbm %s191_s0, 128 }
   0x2   :  { %s16_s13 = sshll.u32 %s136_s12, 4  ;;  %p89_p0 = scmp.ne.s32.totalorder %s191_s0, %s88_s16  ;;  %s17_s13 = int_to_ptr.vmem [resolvable:$true] %s16_s13 }
   0x3   :  { %p92_p1 = scmp.lt.u32.totalorder %s88_s16, %s191_s0 }
   0x5   :  { %p94_p2 = pnand %p92_p1, %p89_p0 }
   0x7   :  { %97 = shalt.err (!%p94_p2)
}
   0x8   :  { %s98_s21 = scalar_lea.vmem %s17_s13, 128  ;;  %p103_p4 = scmp.lt.s32.totalorder %s17_s13, %s17_s13 }
   0x9   :  { %p99_p3 = scmp.ne.s32.totalorder %s17_s13, %s98_s21  ;;  %p104_p5 = scmp.lt.s32.totalorder %s98_s21, %s98_s21 }
   0xb   :  { %p105_p6 = por %p104_p5, %p103_p4 }
   0xd   :  { %p106_p7 = pnand %p105_p6, %p99_p3 }
   0xf   :  { %109 = shalt.err (!%p106_p7)
}
  0x10   :  { %19 = dma.hbm_to_vmem [thread:$0]  %s191_s0, 128, %s17_s13, [#allocation3]  }
  0x11   :  { %132 = dma.done.wait [#allocation3], 128  }
  0x12   :  { %133 = vsyncadd [#allocation3], 4294967168  ;;  %vm28_vm0 = vcmask 261120   ;;  %v27_v0 = vld [vmem:[#allocation2] sm:$0xff]  ;;  %v55_v20 = vlaneseq  ;;  %s137_s27 = smov [#allocation5]  }
  0x13   :  { %v29_v1 = vsel %vm28_vm0, %v27_v0, 0.0  ;;  %v49_v22 = vld [vmem:[%s192_s1] sm:$0x1]  ;;  %s75_s28 = sshll.u32 %s137_s27, 4  ;;  %s76_s28 = int_to_ptr.vmem [resolvable:$true] %s75_s28 }
  0x14   :  { %v30_v2 = vrot.slane %v29_v1, 4  ;;  %v56_v21 = vshrl.u32 %v55_v20, 7  ;;  %v50_v26 = vld [vmem:[%s193_s2] sm:$0x1]  ;;  %s110_s29 = scalar_lea.vmem %s76_s28, 128  ;;  %p115_p9 = scmp.lt.s32.totalorder %s76_s28, %s76_s28 }
  0x15   :  { %p111_p8 = scmp.ne.s32.totalorder %s76_s28, %s110_s29  ;;  %p116_p10 = scmp.lt.s32.totalorder %s110_s29, %s110_s29 }
  0x16   :  { %v31_v3 = vadd.f32 %v30_v2, %v29_v1  ;;  %v57_v23 = vsub.s32 0, %v56_v21 }
  0x17   :  { %p117_p11 = por %p116_p10, %p115_p9 }
  0x18   :  { %v32_v4 = vrot.slane %v31_v3, 2 }
  0x19   :  { %p118_p12 = pnand %p117_p11, %p111_p8 }
  0x1a   :  { %v33_v5 = vadd.f32 %v32_v4, %v31_v3 }
  0x1c   :  { %v34_v6 = vrot.slane %v33_v5, 1 }
  0x1e   :  { %v35_v7 = vadd.f32 %v34_v6, %v33_v5 }
  0x20   :  { %v36_v8 = vmul.f32 0.125, %v35_v7 }
  0x22   :  { %v37_v9 = vsub.f32 %v27_v0, %v36_v8 }
  0x24   :  { %v38_v10 = vmul.f32 %v37_v9, %v37_v9 }
  0x26   :  { %v39_v11 = vsel %vm28_vm0, %v38_v10, 0.0 }
  0x27   :  { %v40_v12 = vrot.slane %v39_v11, 4 }
  0x29   :  { %v41_v13 = vadd.f32 %v40_v12, %v39_v11 }
  0x2b   :  { %v42_v14 = vrot.slane %v41_v13, 2 }
  0x2d   :  { %v43_v15 = vadd.f32 %v42_v14, %v41_v13 }
  0x2f   :  { %v44_v16 = vrot.slane %v43_v15, 1 }
  0x31   :  { %v45_v17 = vadd.f32 %v44_v16, %v43_v15 }
  0x33   :  { %v46_v18 = vmul.f32 0.125, %v45_v17 }
  0x35   :  { %v47_v19 = vadd.f32 1e-05, %v46_v18 }
  0x37   :  { %86 = vrsqrt.f32 %v47_v19 }
  0x41   :  { %v87_v24 = vpop.eup %86 }
  0x42   :  { %v51_v25 = vmul.f32 %v87_v24, %v49_v22 }
  0x44   :  { %v52_v27 = vmul.f32 %v51_v25, %v36_v8  ;;  %v58_v28 = vrot.slane %v51_v25, %v57_v23 }
  0x46   :  { %v53_v29 = vsub.f32 %v50_v26, %v52_v27  ;;  %v60_v30 = vmul.f32 %v58_v28, %v27_v0 }
  0x48   :  { %v65_v31 = vrot.slane %v53_v29, %v57_v23 }
  0x4a   :  { %v67_v32 = vadd.f32 %v65_v31, %v60_v30 }
  0x4c   :  { %68 = vst.msk [vmem:[#allocation5] sm:$0xff] %vm28_vm0, %v67_v32 }
  0x4d   :  { %121 = shalt.err (!%p118_p12)
}
  0x4e   :  { %s122_s30 = scalar_lea.hbm %s194_s3, 128 }
  0x4f   :  { %p123_p13 = scmp.ne.s32.totalorder %s194_s3, %s122_s30  ;;  %p126_p0 = scmp.lt.u32.totalorder %s122_s30, %s194_s3 }
  0x51   :  { %p128_p1 = pnand %p126_p0, %p123_p13 }
  0x53   :  { %131 = shalt.err (!%p128_p1)
}
  0x54   :  { %78 = dma.vmem_to_hbm [thread:$0]  %s76_s28, 128, %s194_s3, [#allocation4]  }
  0x55   :  { %134 = dma.done.wait [#allocation4], 128  }
  0x56   :  { %135 = vsyncadd [#allocation4], 4294967168 }
  0x57   :  { %82 = vsyncpa [#allocation3], 1 }
  0x58   :  { %83 = vsyncpa [#allocation4], 1 }

</bundles_post_ra>
